<compile_context>
chip_gen: v7x
topology: tpu7x:2x2x1
jax: 0.10.0
libtpu: 0.0.40
codegen_flags: <defaults>
</compile_context>

<pallas_src>
import functools

import jax
import jax.numpy as jnp
from jax.experimental import pallas as pl
from jax.experimental.pallas import tpu as pltpu

_LANE = 128
_SUBLANE = 8
_NEG_BIG = -1e30  # pad-logit / mask value: exp() underflows to exactly 0 in f32
_VMEM_LIMIT = 32 * 1024 * 1024      # fits scoped VMEM on v5e/v6e/v7x
_VMEM_BUDGET = 24 * 1024 * 1024     # tile-sizing budget (headroom under the limit)


def _round_up(v, m):
    return ((v + m - 1) // m) * m


# --------------------------------------------------------------------------- #
# Kernels
# --------------------------------------------------------------------------- #
def _probs_kernel(x_ref, w_ref, b_ref, probs_ref):
    """probs = softmax(x @ W + b, axis=-1) for one (TB, D) batch tile.

    The class axis is pre-padded to a multiple of 128 lanes (padded classes have
    bias=-1e30 -> probability exactly 0), so the MXU N-dim is >=128 and the
    output store is lane-dense.
    """
    logits = jnp.dot(x_ref[...], w_ref[...],
                     preferred_element_type=jnp.float32) + b_ref[...]
    m = jnp.max(logits, axis=-1, keepdims=True)
    e = jnp.exp(logits - m)
    denom = jnp.sum(e, axis=-1, keepdims=True)
    probs_ref[...] = (e * pl.reciprocal(denom, approx=False)).astype(probs_ref.dtype)


def _loss_kernel(x_ref, w_ref, b_ref, y_ref, loss_ref, *, num_classes, batch, tb):
    """Accumulates sum_b -log_softmax(softmax(logits))[b, y_b] into loss_ref[0, 0].

    Faithful to the PyTorch module: cross_entropy is applied to the softmax
    *probabilities* (second log-softmax, restricted to the real class columns).
    Rows/columns that exist only because of tile padding are masked out.
    """
    i = pl.program_id(0)

    @pl.when(i == 0)
    def _():
        loss_ref[...] = jnp.zeros_like(loss_ref)

    # First softmax (the module's activation).
    logits = jnp.dot(x_ref[...], w_ref[...],
                     preferred_element_type=jnp.float32) + b_ref[...]
    m = jnp.max(logits, axis=-1, keepdims=True)
    e = jnp.exp(logits - m)
    probs = e * pl.reciprocal(jnp.sum(e, axis=-1, keepdims=True), approx=False)

    tb_, cp = probs.shape
    col = jax.lax.broadcasted_iota(jnp.int32, (tb_, cp), 1)
    valid_col = col < num_classes

    # Second log-softmax (inside F.cross_entropy), over the *real* class columns
    # of the probabilities.  We only need its value at the label column:
    #   log_softmax(p)[b, y_b] = (p[b, y_b] - pm_b) - log(sum_c exp(p[b,c] - pm_b))
    pmask = jnp.where(valid_col, probs, _NEG_BIG)
    pm = jnp.max(pmask, axis=-1, keepdims=True)
    pe = jnp.where(valid_col, jnp.exp(pmask - pm), 0.0)
    log_denom = jnp.log(jnp.sum(pe, axis=-1, keepdims=True))

    labels = y_ref[...]                                       # (TB, 1) int32
    onehot = col == labels                                    # labels < num_classes
    p_y = jnp.sum(jnp.where(onehot, probs, 0.0), axis=-1, keepdims=True)
    nll = -(p_y - pm) + log_denom                             # (TB, 1)

    row = jax.lax.broadcasted_iota(jnp.int32, (tb_, 1), 0)
    valid_row = (i * tb + row) < batch                        # mask batch-pad rows
    nll = jnp.where(valid_row, nll, 0.0)

    loss_ref[...] = loss_ref[...] + jnp.sum(nll, axis=0, keepdims=True)


# --------------------------------------------------------------------------- #
# Wrapper
# --------------------------------------------------------------------------- #
def prepare_params(weight, bias):
    """One-time parameter prep (analogue of doing it at nn.Linear init time):
    transpose the PyTorch (out, in) weight to (in, out) and pad the class axis
    up to a multiple of 128 lanes. Padded classes get zero weight rows and a
    bias of -1e30 so their softmax probability is exactly 0."""
    c, d = weight.shape
    cp = _round_up(max(c, 1), _LANE)
    w_t = jnp.transpose(weight).astype(jnp.float32)                     # (D, C)
    w_t = jnp.pad(w_t, ((0, 0), (0, cp - c)))                           # (D, Cp)
    b = jnp.pad(bias.astype(jnp.float32), (0, cp - c),
                constant_values=_NEG_BIG).reshape(1, cp)                # (1, Cp)
    return w_t, b


def _choose_batch_tile(b, d, cp, vmem_budget_bytes=_VMEM_BUDGET):
    """Largest batch tile (multiple of 8, capped at 512) whose double-buffered
    x/probs/label tiles plus the resident weight/bias fit the VMEM budget."""
    b8 = _round_up(b, _SUBLANE)
    resident = 4 * (d * cp + cp)                  # weight + bias (f32), resident
    per_row = 4 * 2 * (d + cp + 1)                # 2x-buffered x, probs, label rows
    avail = max(vmem_budget_bytes - resident, per_row * _SUBLANE)
    tb = min(512, b8, (avail // per_row) // _SUBLANE * _SUBLANE)
    return max(_SUBLANE, tb)


def torch_class_model_forward(x, params, num_classes, y=None):
    """Pallas forward of TorchClassModel.

    x:           (B, D) float32
    params:      (w_t_padded (D, Cp), bias_padded (1, Cp)) from prepare_params()
    num_classes: real number of output classes C (<= Cp)
    y:           optional (B,) integer labels

    Returns softmax probabilities (B, C) when y is None, otherwise the scalar
    mean cross-entropy loss of those probabilities (PyTorch semantics).
    """
    w_t, b2 = params
    B, D = x.shape
    Dw, Cp = w_t.shape
    assert D == Dw and num_classes <= Cp

    tb = _choose_batch_tile(B, D, Cp)
    bp = _round_up(B, tb)
    nblk = bp // tb

    x_p = x if bp == B else jnp.pad(x, ((0, bp - B), (0, 0)))

    x_spec = pl.BlockSpec((tb, D), lambda i: (i, 0))
    w_spec = pl.BlockSpec((D, Cp), lambda i: (0, 0))     # resident across the grid
    b_spec = pl.BlockSpec((1, Cp), lambda i: (0, 0))

    if y is None:
        probs = pl.pallas_call(
            _probs_kernel,
            grid=(nblk,),
            in_specs=[x_spec, w_spec, b_spec],
            out_specs=pl.BlockSpec((tb, Cp), lambda i: (i, 0)),
            out_shape=jax.ShapeDtypeStruct((bp, Cp), jnp.float32),
            compiler_params=pltpu.CompilerParams(
                dimension_semantics=("parallel",),        # megacore split on v7x
                vmem_limit_bytes=_VMEM_LIMIT),
        )(x_p, w_t, b2)
        return probs[:B, :num_classes]

    y_p = y.astype(jnp.int32).reshape(B, 1)
    if bp != B:
        y_p = jnp.pad(y_p, ((0, bp - B), (0, 0)))

    kernel = functools.partial(_loss_kernel, num_classes=num_classes,
                               batch=B, tb=tb)
    loss_sum = pl.pallas_call(
        kernel,
        grid=(nblk,),
        in_specs=[x_spec, w_spec, b_spec,
                  pl.BlockSpec((tb, 1), lambda i: (i, 0))],
        out_specs=pl.BlockSpec((1, 1), lambda i: (0, 0)),  # in-kernel reduction
        out_shape=jax.ShapeDtypeStruct((1, 1), jnp.float32),
        compiler_params=pltpu.CompilerParams(
            dimension_semantics=("arbitrary",),            # accumulator axis
            vmem_limit_bytes=_VMEM_LIMIT),
    )(x_p, w_t, b2, y_p)
    return loss_sum[0, 0] / B


# --------------------------------------------------------------------------- #
# Pure-JAX reference
# --------------------------------------------------------------------------- #
def _reference(x, weight, bias, y=None):
    logits = x @ weight.T + bias
    probs = jax.nn.softmax(logits, axis=1)
    if y is None:
        return probs
    log_sm = jax.nn.log_softmax(probs, axis=1)
    nll = -jnp.take_along_axis(log_sm, y[:, None].astype(jnp.int32), axis=1)
    return jnp.mean(nll)


if __name__ == "__main__":
    B, D, C = 8, 32, 8  # batch, input_size, out_size

    key = jax.random.PRNGKey(0)
    kx, kw, kb, ky = jax.random.split(key, 4)

    x = jax.random.normal(kx, (B, D), dtype=jnp.float32)
    # Deterministic Linear params (PyTorch layout: weight (out, in), bias (out,))
    bound = 1.0 / (D ** 0.5)
    weight = jax.random.uniform(kw, (C, D), jnp.float32, -bound, bound)
    bias = jax.random.uniform(kb, (C,), jnp.float32, -bound, bound)
    y = jax.random.randint(ky, (B,), 0, C, dtype=jnp.int32)

    # One-time parameter prep (transpose + lane-pad), done outside the hot path.
    params = prepare_params(weight, bias)

    # Inference path (y=None): softmax probabilities
    probs = jax.block_until_ready(torch_class_model_forward(x, params, C))
    # Training path (y given): mean cross-entropy loss of the probabilities
    loss = jax.block_until_ready(torch_class_model_forward(x, params, C, y))

    # Sanity check against a pure-JAX reference
    probs_ref = _reference(x, weight, bias)
    loss_ref = _reference(x, weight, bias, y)
    assert jnp.allclose(probs, probs_ref, atol=1e-5, rtol=1e-5)
    assert jnp.allclose(loss, loss_ref, atol=1e-5, rtol=1e-5)

    print("KERNEL_OK")
</pallas_src>

<mosaic_0001>
module attributes {stable_mosaic.version = 11 : i64} {
  func.func @_probs_kernel(%arg0: i32, %arg1: memref<8x32xf32, #tpu.memory_space<vmem>>, %arg2: memref<32x128xf32, #tpu.memory_space<vmem>>, %arg3: memref<1x128xf32, #tpu.memory_space<vmem>>, %arg4: memref<8x128xf32, #tpu.memory_space<vmem>>) attributes {dimension_semantics = [#tpu.dimension_semantics<parallel>], iteration_bounds = array<i64: 1>, scalar_prefetch = 0 : i64, scratch_operands = 0 : i64, tpu.core_type = #tpu.core_type<tc>, window_params = [{transform_indices = @transform_0, window_bounds = array<i64: 8, 32>}, {pipeline_mode = #tpu.pipeline_mode<synchronous>, transform_indices = @transform_1, window_bounds = array<i64: 32, 128>}, {pipeline_mode = #tpu.pipeline_mode<synchronous>, transform_indices = @transform_2, window_bounds = array<i64: 1, 128>}, {transform_indices = @transform_3, window_bounds = array<i64: 8, 128>}]} {
    %c0 = arith.constant 0 : index
    %c0_0 = arith.constant 0 : index
    %0 = vector.load %arg1[%c0, %c0_0] : memref<8x32xf32, #tpu.memory_space<vmem>>, vector<8x32xf32>
    %c0_1 = arith.constant 0 : index
    %c0_2 = arith.constant 0 : index
    %1 = vector.load %arg2[%c0_1, %c0_2] : memref<32x128xf32, #tpu.memory_space<vmem>>, vector<32x128xf32>
    %cst = arith.constant dense<0.000000e+00> : vector<8x128xf32>
    %2 = tpu.matmul %0, %1, %cst {dimension_numbers = #tpu.dot_dimension_numbers<[1], [0], [0], [1], [0, 0, 1, 1], [], []>} : vector<8x32xf32>, vector<32x128xf32>, vector<8x128xf32> -> vector<8x128xf32>
    %c0_3 = arith.constant 0 : index
    %c0_4 = arith.constant 0 : index
    %3 = vector.load %arg3[%c0_3, %c0_4] : memref<1x128xf32, #tpu.memory_space<vmem>>, vector<1x128xf32>
    %4 = vector.broadcast %3 : vector<1x128xf32> to vector<8x128xf32>
    %5 = arith.addf %2, %4 : vector<8x128xf32>
    %cst_5 = arith.constant dense<0xFF800000> : vector<8xf32>
    %6 = vector.multi_reduction <maximumf>, %5, %cst_5 [1] : vector<8x128xf32> to vector<8xf32>
    %7 = vector.shape_cast %6 : vector<8xf32> to vector<8x1xf32>
    %8 = vector.broadcast %7 : vector<8x1xf32> to vector<8x128xf32>
    %9 = arith.subf %5, %8 : vector<8x128xf32>
    %10 = math.exp %9 : vector<8x128xf32>
    %cst_6 = arith.constant dense<0.000000e+00> : vector<8xf32>
    %11 = vector.multi_reduction <add>, %10, %cst_6 [1] : vector<8x128xf32> to vector<8xf32>
    %12 = vector.shape_cast %11 : vector<8xf32> to vector<8x1xf32>
    %13 = tpu.reciprocal %12 : vector<8x1xf32> -> vector<8x1xf32>
    %14 = vector.broadcast %13 : vector<8x1xf32> to vector<8x128xf32>
    %15 = arith.mulf %10, %14 : vector<8x128xf32>
    %c0_7 = arith.constant 0 : index
    %c0_8 = arith.constant 0 : index
    %16 = vector.load %arg4[%c0_7, %c0_8] : memref<8x128xf32, #tpu.memory_space<vmem>>, vector<8x128xf32>
    tpu.vector_store %arg4[%c0_7, %c0_8], %15 {strides = array<i32>} : memref<8x128xf32, #tpu.memory_space<vmem>>, vector<8x128xf32>,
    return
  }
  func.func @transform_0(%arg0: i32) -> (i32, i32) {
    %c0_i32 = arith.constant 0 : i32
    %c0_i32_0 = arith.constant 0 : i32
    return %arg0, %c0_i32 : i32, i32
  }
  func.func @transform_1(%arg0: i32) -> (i32, i32) {
    %c0_i32 = arith.constant 0 : i32
    %c0_i32_0 = arith.constant 0 : i32
    %c0_i32_1 = arith.constant 0 : i32
    return %c0_i32, %c0_i32_0 : i32, i32
  }
  func.func @transform_2(%arg0: i32) -> (i32, i32) {
    %c0_i32 = arith.constant 0 : i32
    %c0_i32_0 = arith.constant 0 : i32
    %c0_i32_1 = arith.constant 0 : i32
    return %c0_i32, %c0_i32_0 : i32, i32
  }
  func.func @transform_3(%arg0: i32) -> (i32, i32) {
    %c0_i32 = arith.constant 0 : i32
    %c0_i32_0 = arith.constant 0 : i32
    return %arg0, %c0_i32 : i32, i32
  }
}

</mosaic_0001>

<bundles_post_ra>
// kernel: tpu_custom_call.1
= control target key start
LH: loop header
LB: loop body
LE: loop exit
PB: predicated region body
PF: predicated region fallthrough
CT: control target
= control target key end

     0   :  { %8 = vsyncpa [#allocation3], 0  ;;  %s335_s0 = inlined_call_operand.hbm [shape: f32[8,32], index: 0, kind: input, shape index: {}]   ;;  %s336_s1 = inlined_call_operand.hbm [shape: f32[32,128], index: 1, kind: input, shape index: {}]   ;;  %s337_s2 = inlined_call_operand.vmem [shape: f32[1,128], index: 2, kind: input, shape index: {}]   ;;  %s338_s3 = inlined_call_operand.hbm [shape: f32[8,128], index: 3, kind: output, shape index: {}]  }
   0x1   :  { %9 = vsyncpa [#allocation6], 0 }
   0x2   :  { %10 = vsyncpa [#allocation4], 0  ;;  %s261_s12 = smov [#allocation2]   ;;  %s262_s14 = smov [#allocation5]  }
   0x3   :  { %s17_s13 = sshll.u32 %s261_s12, 4  ;;  %s26_s15 = sshll.u32 %s262_s14, 4  ;;  %s18_s13 = int_to_ptr.vmem [resolvable:$true] %s17_s13  ;;  %s289_s15 = int_to_ptr.vmem [resolvable:$true] %s26_s15 }
   0x4   :  { %s189_s18 = scalar_lea.hbm %s335_s0, 128 }
   0x5   :  { %p190_p0 = scmp.ne.s32.totalorder %s335_s0, %s189_s18  ;;  %p193_p1 = scmp.lt.u32.totalorder %s189_s18, %s335_s0 }
   0x7   :  { %p195_p2 = pnand %p193_p1, %p190_p0 }
   0x9   :  { %198 = shalt.err (!%p195_p2)
}
   0xa   :  { %s199_s23 = scalar_lea.vmem %s18_s13, 128  ;;  %p204_p4 = scmp.lt.s32.totalorder %s18_s13, %s18_s13 }
   0xb   :  { %p200_p3 = scmp.ne.s32.totalorder %s18_s13, %s199_s23  ;;  %p205_p5 = scmp.lt.s32.totalorder %s199_s23, %s199_s23 }
   0xd   :  { %p206_p6 = por %p205_p5, %p204_p4 }
   0xf   :  { %p207_p7 = pnand %p206_p6, %p200_p3 }
  0x11   :  { %210 = shalt.err (!%p207_p7)
}
  0x12   :  { %20 = dma.hbm_to_vmem [thread:$0]  %s335_s0, 128, %s18_s13, [#allocation3]  }
  0x13   :  { %s211_s28 = scalar_lea.hbm %s336_s1, 512 }
  0x14   :  { %p212_p8 = scmp.ne.s32.totalorder %s336_s1, %s211_s28  ;;  %p215_p9 = scmp.lt.u32.totalorder %s211_s28, %s336_s1 }
  0x16   :  { %p217_p10 = pnand %p215_p9, %p212_p8 }
  0x18   :  { %220 = shalt.err (!%p217_p10)
}
  0x19   :  { %s221_s6 = scalar_lea.vmem %s289_s15, 512  ;;  %p226_p12 = scmp.lt.s32.totalorder %s289_s15, %s289_s15 }
  0x1a   :  { %p222_p11 = scmp.ne.s32.totalorder %s289_s15, %s221_s6  ;;  %p227_p13 = scmp.lt.s32.totalorder %s221_s6, %s221_s6 }
  0x1c   :  { %p228_p0 = por %p227_p13, %p226_p12 }
  0x1e   :  { %p229_p1 = pnand %p228_p0, %p222_p11 }
  0x20   :  { %232 = shalt.err (!%p229_p1)
}
  0x21   :  { %s263_s0 = smov 128   ;;  %s264_s7 = smov 8  }
  0x22   :  { %32 = dma.hbm_to_vmem [thread:$0]  %s336_s1, 512, %s289_s15, [#allocation6], %s263_s0, %s263_s0, %s264_s7  }
  0x23   :  { %255 = dma.done.wait [#allocation3], 128  }
  0x24   :  { %256 = vsyncadd [#allocation3], 4294967168 }
  0x25   :  { %257 = dma.done.wait [#allocation6], 512  }
  0x26   :  { %258 = vsyncadd [#allocation6], 4294966784  ;;  %v265_v0 = vmov 0.0|0.0   ;;  %vm266_vm0 = vmmov 0   ;;  %v267_v1 = vmov 0.0   ;;  %v42_v2 = vld [vmem:[#allocation5] sm:$0xff] }
  0x27   :  { %171 = vmatprep.subr.bf16.mxu0 %v265_v0  ;;  %168 = vmatprep.mubr.msk.f32.mxu0 %vm266_vm0, %v267_v1  ;;  %v43_v3 = vld [vmem:[#allocation5 + $0x8] sm:$0xff]  ;;  %v44_v4 = vld [vmem:[#allocation5 + $0x10] sm:$0xff]  ;;  %v45_v6 = vld [vmem:[#allocation5 + $0x18] sm:$0xff]  ;;  %vm53_vm1 = vcmask 261120   ;;  %s268_s11 = smov [#allocation7]  }
  0x28   :  { %v172_v5 = vpack.c.bf16 %v43_v3, %v42_v2  ;;  %v175_v7 = vpack.c.bf16 %v45_v6, %v44_v4  ;;  %v41_v8 = vld [vmem:[#allocation2] sm:$0xff]  ;;  %s143_s12 = sshll.u32 %s268_s11, 4  ;;  %s144_s12 = int_to_ptr.vmem [resolvable:$true] %s143_s12 }
  0x29   :  { %v153_v9 = vld [vmem:[%s337_s2] ss:$0 sm:$0xff]  ;;  %s233_s13 = scalar_lea.vmem %s144_s12, 128  ;;  %p238_p3 = scmp.lt.s32.totalorder %s144_s12, %s144_s12 }
  0x2a   :  { %173 = vmatpush3.bf16.msra.mxu0 %v172_v5  ;;  %p234_p2 = scmp.ne.s32.totalorder %s144_s12, %s233_s13  ;;  %p239_p4 = scmp.lt.s32.totalorder %s233_s13, %s233_s13 }
  0x2b   :  { %174 = vmatprep.subr.bf16.mxu0 %v265_v0 }
  0x2c   :  { %p240_p5 = por %p239_p4, %p238_p3 }
  0x2e   :  { %176 = vmatpush3.bf16.msra.mxu0 %v175_v7  ;;  %p241_p6 = pnand %p240_p5, %p234_p2 }
  0x31   :  { %169 = vmatmul.mubr.msk.f32.vlgmr.msra.gmra.mrb[0].mxu0 %vm53_vm1, %v41_v8 }
 0x104   :  { %v123_v10 = vpop.f32.mrb[0].mxu0 }
 0x105   :  { %v124_v11 = vadd.f32 %v153_v9, %v123_v10  ;;  %v170_v12 = vpop.f32.mrb[1].mxu0 }
 0x107   :  { %127 = vmax.xlane.f32.xlu0 %v124_v11 }
 0x194   :  { %v128_v13 = vpop.xlane.xlu0 %127 }
 0x195   :  { %v129_v14 = vsub.f32 %v124_v11, %v128_v13 }
 0x197   :  { %v130_v15 = vmul.f32 1.442695, %v129_v14 }
 0x199   :  { %185 = vpow2.f32 %v130_v15 }
 0x1a3   :  { %v186_v16 = vpop.eup %185 }
 0x1a4   :  { %132 = vadd.xlane.f32.xlu0 %v186_v16 }
 0x231   :  { %v133_v17 = vpop.xlane.xlu0 %132 }
 0x232   :  { %187 = vrcp.f32 %v133_v17 }
 0x23c   :  { %v188_v18 = vpop.eup %187 }
 0x23d   :  { %v135_v19 = vmul.f32 %v188_v18, %v186_v16 }
 0x23f   :  { %136 = vst [vmem:[#allocation7] sm:$0xff] %v135_v19 }
 0x240   :  { %244 = shalt.err (!%p241_p6)
}
 0x241   :  { %s245_s15 = scalar_lea.hbm %s338_s3, 128 }
 0x242   :  { %p246_p7 = scmp.ne.s32.totalorder %s338_s3, %s245_s15  ;;  %p249_p8 = scmp.lt.u32.totalorder %s245_s15, %s338_s3 }
 0x244   :  { %p251_p9 = pnand %p249_p8, %p246_p7 }
 0x246   :  { %254 = shalt.err (!%p251_p9)
}
 0x247   :  { %146 = dma.vmem_to_hbm [thread:$0]  %s144_s12, 128, %s338_s3, [#allocation4]  }
 0x248   :  { %259 = dma.done.wait [#allocation4], 128  }
 0x249   :  { %260 = vsyncadd [#allocation4], 4294967168 }
 0x24a   :  { %150 = vsyncpa [#allocation3], 1 }
 0x24b   :  { %151 = vsyncpa [#allocation6], 1 }
 0x24c   :  { %152 = vsyncpa [#allocation4], 1 }

</bundles_post_ra>
